<compile_context>
chip_gen: v5e
topology: v5e:2x2
jax: 0.10.0
libtpu: 0.0.40
codegen_flags: <defaults>
</compile_context>

<pallas_src>
import jax
import jax.numpy as jnp
from jax.experimental import pallas as pl
from jax.experimental.pallas import tpu as pltpu


def _v9_kernel(x_ref, out_ref, s_ref):
    # x_ref:   (B, C, H, W)   whole input, single grid step
    # out_ref: (B, W, C*C)    whole output
    # s_ref:   (C*C, W) f32   VMEM scratch holding one batch's Gram rows
    B, C, H, W = x_ref.shape
    for b in range(B):                       # static unroll; B is tiny
        x = x_ref[b].astype(jnp.float32)     # (C, H, W) — accumulate in f32
        for c in range(C):                   # static unroll; live set stays ~input-sized
            # prod[d, h, w] = x[c, h, w] * x[d, h, w]   (VPU broadcast multiply)
            prod = x[c] * x                  # (C, H, W)
            # VALU pre-add of sublane halves before the XLU cross-sublane reduce.
            h = H
            while h > 8 and h % 2 == 0:
                half = h // 2
                prod = prod[:, :half, :] + prod[:, half:, :]
                h = half
            # row[d, w] = sum_h x[c,h,w] * x[d,h,w]
            s_ref[c * C:(c + 1) * C, :] = jnp.sum(prod, axis=1)   # (C, W)
        s = s_ref[...]                                            # (C*C, W)
        # One small transpose makes W major: a single row store per batch.
        out_ref[b] = s.T.astype(out_ref.dtype)                    # (W, C*C)


@jax.jit
def model_forward(x1, x2):
    """Reproduces Model.forward(x1, x2) -> v9.

    x1 only feeds t5 / v6 in the PyTorch code, which are never returned and
    have no side effects, so it does not contribute to the output.
    """
    del x1  # dead code in the reference forward

    B, C, H, W = x2.shape
    out = pl.pallas_call(
        _v9_kernel,
        out_shape=jax.ShapeDtypeStruct((B, W, C * C), x2.dtype),
        grid=(1,),  # single step: whole problem in one VMEM-resident block
        in_specs=[pl.BlockSpec((B, C, H, W), lambda i: (0, 0, 0, 0))],
        out_specs=pl.BlockSpec((B, W, C * C), lambda i: (0, 0, 0)),
        scratch_shapes=[pltpu.VMEM((C * C, W), jnp.float32)],
        compiler_params=pltpu.CompilerParams(
            dimension_semantics=("arbitrary",),
        ),
    )(x2)
    # Row-major split of the last dim: free (metadata-only), not a transpose.
    return out.reshape(B, W, C, C)


if __name__ == "__main__":
    key = jax.random.PRNGKey(0)
    k1, k2 = jax.random.split(key)

    # Small shapes consistent with the module's NCHW 4-D inputs.
    B, C, H, W = 2, 4, 16, 16
    x1 = jax.random.normal(k1, (B, C, H, W), dtype=jnp.float32)
    x2 = jax.random.normal(k2, (B, C, H, W), dtype=jnp.float32)

    v9 = jax.block_until_ready(model_forward(x1, x2))

    # Reference (plain JAX) check of the same semantics.
    t2_ref = jnp.transpose(x2, (0, 3, 1, 2))                  # (B, W, C, H)
    v9_ref = jnp.einsum("bwch,bwdh->bwcd", t2_ref, t2_ref)    # (B, W, C, C)
    assert v9.shape == (B, W, C, C)
    assert jnp.allclose(v9, v9_ref, atol=1e-5, rtol=1e-5)

    print("KERNEL_OK")
</pallas_src>

<mosaic_0001>
module attributes {stable_mosaic.version = 11 : i64} {
  func.func @_v9_kernel(%arg0: i32, %arg1: memref<2x4x16x16xf32, #tpu.memory_space<vmem>>, %arg2: memref<2x16x16xf32, #tpu.memory_space<vmem>>, %arg3: memref<16x16xf32, #tpu.memory_space<vmem>>) attributes {dimension_semantics = [#tpu.dimension_semantics<arbitrary>], iteration_bounds = array<i64: 1>, scalar_prefetch = 0 : i64, scratch_operands = 1 : i64, tpu.core_type = #tpu.core_type<tc>, window_params = [{pipeline_mode = #tpu.pipeline_mode<synchronous>, transform_indices = @transform_0, window_bounds = array<i64: 2, 4, 16, 16>}, {pipeline_mode = #tpu.pipeline_mode<synchronous>, transform_indices = @transform_1, window_bounds = array<i64: 2, 16, 16>}]} {
    %c0 = arith.constant 0 : index
    %c0_0 = arith.constant 0 : index
    %c0_1 = arith.constant 0 : index
    %c0_2 = arith.constant 0 : index
    %0 = vector.load %arg1[%c0, %c0_0, %c0_1, %c0_2] : memref<2x4x16x16xf32, #tpu.memory_space<vmem>>, vector<1x4x16x16xf32>
    %1 = vector.shape_cast %0 : vector<1x4x16x16xf32> to vector<4x16x16xf32>
    %2 = vector.extract_strided_slice %1 {offsets = [0, 0, 0], sizes = [1, 16, 16], strides = [1, 1, 1]} : vector<4x16x16xf32> to vector<1x16x16xf32>
    %3 = vector.shape_cast %2 : vector<1x16x16xf32> to vector<16x16xf32>
    %4 = vector.shape_cast %3 : vector<16x16xf32> to vector<1x16x16xf32>
    %5 = vector.broadcast %4 : vector<1x16x16xf32> to vector<4x16x16xf32>
    %6 = arith.mulf %5, %1 : vector<4x16x16xf32>
    %7 = vector.extract_strided_slice %6 {offsets = [0, 0, 0], sizes = [4, 8, 16], strides = [1, 1, 1]} : vector<4x16x16xf32> to vector<4x8x16xf32>
    %8 = vector.extract_strided_slice %6 {offsets = [0, 8, 0], sizes = [4, 8, 16], strides = [1, 1, 1]} : vector<4x16x16xf32> to vector<4x8x16xf32>
    %9 = arith.addf %7, %8 : vector<4x8x16xf32>
    %cst = arith.constant dense<0.000000e+00> : vector<4x16xf32>
    %10 = vector.multi_reduction <add>, %9, %cst [1] : vector<4x8x16xf32> to vector<4x16xf32>
    %c0_3 = arith.constant 0 : index
    %c0_4 = arith.constant 0 : index
    %11 = vector.load %arg3[%c0_3, %c0_4] : memref<16x16xf32, #tpu.memory_space<vmem>>, vector<4x16xf32>
    tpu.vector_store %arg3[%c0_3, %c0_4], %10 {strides = array<i32>} : memref<16x16xf32, #tpu.memory_space<vmem>>, vector<4x16xf32>,
    %12 = vector.extract_strided_slice %1 {offsets = [1, 0, 0], sizes = [1, 16, 16], strides = [1, 1, 1]} : vector<4x16x16xf32> to vector<1x16x16xf32>
    %13 = vector.shape_cast %12 : vector<1x16x16xf32> to vector<16x16xf32>
    %14 = vector.shape_cast %13 : vector<16x16xf32> to vector<1x16x16xf32>
    %15 = vector.broadcast %14 : vector<1x16x16xf32> to vector<4x16x16xf32>
    %16 = arith.mulf %15, %1 : vector<4x16x16xf32>
    %17 = vector.extract_strided_slice %16 {offsets = [0, 0, 0], sizes = [4, 8, 16], strides = [1, 1, 1]} : vector<4x16x16xf32> to vector<4x8x16xf32>
    %18 = vector.extract_strided_slice %16 {offsets = [0, 8, 0], sizes = [4, 8, 16], strides = [1, 1, 1]} : vector<4x16x16xf32> to vector<4x8x16xf32>
    %19 = arith.addf %17, %18 : vector<4x8x16xf32>
    %cst_5 = arith.constant dense<0.000000e+00> : vector<4x16xf32>
    %20 = vector.multi_reduction <add>, %19, %cst_5 [1] : vector<4x8x16xf32> to vector<4x16xf32>
    %c4 = arith.constant 4 : index
    %c0_6 = arith.constant 0 : index
    %21 = vector.load %arg3[%c4, %c0_6] : memref<16x16xf32, #tpu.memory_space<vmem>>, vector<4x16xf32>
    tpu.vector_store %arg3[%c4, %c0_6], %20 {strides = array<i32>} : memref<16x16xf32, #tpu.memory_space<vmem>>, vector<4x16xf32>,
    %22 = vector.extract_strided_slice %1 {offsets = [2, 0, 0], sizes = [1, 16, 16], strides = [1, 1, 1]} : vector<4x16x16xf32> to vector<1x16x16xf32>
    %23 = vector.shape_cast %22 : vector<1x16x16xf32> to vector<16x16xf32>
    %24 = vector.shape_cast %23 : vector<16x16xf32> to vector<1x16x16xf32>
    %25 = vector.broadcast %24 : vector<1x16x16xf32> to vector<4x16x16xf32>
    %26 = arith.mulf %25, %1 : vector<4x16x16xf32>
    %27 = vector.extract_strided_slice %26 {offsets = [0, 0, 0], sizes = [4, 8, 16], strides = [1, 1, 1]} : vector<4x16x16xf32> to vector<4x8x16xf32>
    %28 = vector.extract_strided_slice %26 {offsets = [0, 8, 0], sizes = [4, 8, 16], strides = [1, 1, 1]} : vector<4x16x16xf32> to vector<4x8x16xf32>
    %29 = arith.addf %27, %28 : vector<4x8x16xf32>
    %cst_7 = arith.constant dense<0.000000e+00> : vector<4x16xf32>
    %30 = vector.multi_reduction <add>, %29, %cst_7 [1] : vector<4x8x16xf32> to vector<4x16xf32>
    %c8 = arith.constant 8 : index
    %c0_8 = arith.constant 0 : index
    %31 = vector.load %arg3[%c8, %c0_8] : memref<16x16xf32, #tpu.memory_space<vmem>>, vector<4x16xf32>
    tpu.vector_store %arg3[%c8, %c0_8], %30 {strides = array<i32>} : memref<16x16xf32, #tpu.memory_space<vmem>>, vector<4x16xf32>,
    %32 = vector.extract_strided_slice %1 {offsets = [3, 0, 0], sizes = [1, 16, 16], strides = [1, 1, 1]} : vector<4x16x16xf32> to vector<1x16x16xf32>
    %33 = vector.shape_cast %32 : vector<1x16x16xf32> to vector<16x16xf32>
    %34 = vector.shape_cast %33 : vector<16x16xf32> to vector<1x16x16xf32>
    %35 = vector.broadcast %34 : vector<1x16x16xf32> to vector<4x16x16xf32>
    %36 = arith.mulf %35, %1 : vector<4x16x16xf32>
    %37 = vector.extract_strided_slice %36 {offsets = [0, 0, 0], sizes = [4, 8, 16], strides = [1, 1, 1]} : vector<4x16x16xf32> to vector<4x8x16xf32>
    %38 = vector.extract_strided_slice %36 {offsets = [0, 8, 0], sizes = [4, 8, 16], strides = [1, 1, 1]} : vector<4x16x16xf32> to vector<4x8x16xf32>
    %39 = arith.addf %37, %38 : vector<4x8x16xf32>
    %cst_9 = arith.constant dense<0.000000e+00> : vector<4x16xf32>
    %40 = vector.multi_reduction <add>, %39, %cst_9 [1] : vector<4x8x16xf32> to vector<4x16xf32>
    %c12 = arith.constant 12 : index
    %c0_10 = arith.constant 0 : index
    %41 = vector.load %arg3[%c12, %c0_10] : memref<16x16xf32, #tpu.memory_space<vmem>>, vector<4x16xf32>
    tpu.vector_store %arg3[%c12, %c0_10], %40 {strides = array<i32>} : memref<16x16xf32, #tpu.memory_space<vmem>>, vector<4x16xf32>,
    %c0_11 = arith.constant 0 : index
    %c0_12 = arith.constant 0 : index
    %42 = vector.load %arg3[%c0_11, %c0_12] : memref<16x16xf32, #tpu.memory_space<vmem>>, vector<16x16xf32>
    %43 = tpu.transpose %42, [1, 0] : vector<16x16xf32> -> vector<16x16xf32>
    %c0_13 = arith.constant 0 : index
    %c0_14 = arith.constant 0 : index
    %c0_15 = arith.constant 0 : index
    %44 = vector.load %arg2[%c0_13, %c0_14, %c0_15] : memref<2x16x16xf32, #tpu.memory_space<vmem>>, vector<1x16x16xf32>
    %45 = vector.shape_cast %44 : vector<1x16x16xf32> to vector<16x16xf32>
    %46 = vector.shape_cast %43 : vector<16x16xf32> to vector<1x16x16xf32>
    tpu.vector_store %arg2[%c0_13, %c0_14, %c0_15], %46 {strides = array<i32>} : memref<2x16x16xf32, #tpu.memory_space<vmem>>, vector<1x16x16xf32>,
    %c1 = arith.constant 1 : index
    %c0_16 = arith.constant 0 : index
    %c0_17 = arith.constant 0 : index
    %c0_18 = arith.constant 0 : index
    %47 = vector.load %arg1[%c1, %c0_16, %c0_17, %c0_18] : memref<2x4x16x16xf32, #tpu.memory_space<vmem>>, vector<1x4x16x16xf32>
    %48 = vector.shape_cast %47 : vector<1x4x16x16xf32> to vector<4x16x16xf32>
    %49 = vector.extract_strided_slice %48 {offsets = [0, 0, 0], sizes = [1, 16, 16], strides = [1, 1, 1]} : vector<4x16x16xf32> to vector<1x16x16xf32>
    %50 = vector.shape_cast %49 : vector<1x16x16xf32> to vector<16x16xf32>
    %51 = vector.shape_cast %50 : vector<16x16xf32> to vector<1x16x16xf32>
    %52 = vector.broadcast %51 : vector<1x16x16xf32> to vector<4x16x16xf32>
    %53 = arith.mulf %52, %48 : vector<4x16x16xf32>
    %54 = vector.extract_strided_slice %53 {offsets = [0, 0, 0], sizes = [4, 8, 16], strides = [1, 1, 1]} : vector<4x16x16xf32> to vector<4x8x16xf32>
    %55 = vector.extract_strided_slice %53 {offsets = [0, 8, 0], sizes = [4, 8, 16], strides = [1, 1, 1]} : vector<4x16x16xf32> to vector<4x8x16xf32>
    %56 = arith.addf %54, %55 : vector<4x8x16xf32>
    %cst_19 = arith.constant dense<0.000000e+00> : vector<4x16xf32>
    %57 = vector.multi_reduction <add>, %56, %cst_19 [1] : vector<4x8x16xf32> to vector<4x16xf32>
    %c0_20 = arith.constant 0 : index
    %c0_21 = arith.constant 0 : index
    %58 = vector.load %arg3[%c0_20, %c0_21] : memref<16x16xf32, #tpu.memory_space<vmem>>, vector<4x16xf32>
    tpu.vector_store %arg3[%c0_20, %c0_21], %57 {strides = array<i32>} : memref<16x16xf32, #tpu.memory_space<vmem>>, vector<4x16xf32>,
    %59 = vector.extract_strided_slice %48 {offsets = [1, 0, 0], sizes = [1, 16, 16], strides = [1, 1, 1]} : vector<4x16x16xf32> to vector<1x16x16xf32>
    %60 = vector.shape_cast %59 : vector<1x16x16xf32> to vector<16x16xf32>
    %61 = vector.shape_cast %60 : vector<16x16xf32> to vector<1x16x16xf32>
    %62 = vector.broadcast %61 : vector<1x16x16xf32> to vector<4x16x16xf32>
    %63 = arith.mulf %62, %48 : vector<4x16x16xf32>
    %64 = vector.extract_strided_slice %63 {offsets = [0, 0, 0], sizes = [4, 8, 16], strides = [1, 1, 1]} : vector<4x16x16xf32> to vector<4x8x16xf32>
    %65 = vector.extract_strided_slice %63 {offsets = [0, 8, 0], sizes = [4, 8, 16], strides = [1, 1, 1]} : vector<4x16x16xf32> to vector<4x8x16xf32>
    %66 = arith.addf %64, %65 : vector<4x8x16xf32>
    %cst_22 = arith.constant dense<0.000000e+00> : vector<4x16xf32>
    %67 = vector.multi_reduction <add>, %66, %cst_22 [1] : vector<4x8x16xf32> to vector<4x16xf32>
    %c4_23 = arith.constant 4 : index
    %c0_24 = arith.constant 0 : index
    %68 = vector.load %arg3[%c4_23, %c0_24] : memref<16x16xf32, #tpu.memory_space<vmem>>, vector<4x16xf32>
    tpu.vector_store %arg3[%c4_23, %c0_24], %67 {strides = array<i32>} : memref<16x16xf32, #tpu.memory_space<vmem>>, vector<4x16xf32>,
    %69 = vector.extract_strided_slice %48 {offsets = [2, 0, 0], sizes = [1, 16, 16], strides = [1, 1, 1]} : vector<4x16x16xf32> to vector<1x16x16xf32>
    %70 = vector.shape_cast %69 : vector<1x16x16xf32> to vector<16x16xf32>
    %71 = vector.shape_cast %70 : vector<16x16xf32> to vector<1x16x16xf32>
    %72 = vector.broadcast %71 : vector<1x16x16xf32> to vector<4x16x16xf32>
    %73 = arith.mulf %72, %48 : vector<4x16x16xf32>
    %74 = vector.extract_strided_slice %73 {offsets = [0, 0, 0], sizes = [4, 8, 16], strides = [1, 1, 1]} : vector<4x16x16xf32> to vector<4x8x16xf32>
    %75 = vector.extract_strided_slice %73 {offsets = [0, 8, 0], sizes = [4, 8, 16], strides = [1, 1, 1]} : vector<4x16x16xf32> to vector<4x8x16xf32>
    %76 = arith.addf %74, %75 : vector<4x8x16xf32>
    %cst_25 = arith.constant dense<0.000000e+00> : vector<4x16xf32>
    %77 = vector.multi_reduction <add>, %76, %cst_25 [1] : vector<4x8x16xf32> to vector<4x16xf32>
    %c8_26 = arith.constant 8 : index
    %c0_27 = arith.constant 0 : index
    %78 = vector.load %arg3[%c8_26, %c0_27] : memref<16x16xf32, #tpu.memory_space<vmem>>, vector<4x16xf32>
    tpu.vector_store %arg3[%c8_26, %c0_27], %77 {strides = array<i32>} : memref<16x16xf32, #tpu.memory_space<vmem>>, vector<4x16xf32>,
    %79 = vector.extract_strided_slice %48 {offsets = [3, 0, 0], sizes = [1, 16, 16], strides = [1, 1, 1]} : vector<4x16x16xf32> to vector<1x16x16xf32>
    %80 = vector.shape_cast %79 : vector<1x16x16xf32> to vector<16x16xf32>
    %81 = vector.shape_cast %80 : vector<16x16xf32> to vector<1x16x16xf32>
    %82 = vector.broadcast %81 : vector<1x16x16xf32> to vector<4x16x16xf32>
    %83 = arith.mulf %82, %48 : vector<4x16x16xf32>
    %84 = vector.extract_strided_slice %83 {offsets = [0, 0, 0], sizes = [4, 8, 16], strides = [1, 1, 1]} : vector<4x16x16xf32> to vector<4x8x16xf32>
    %85 = vector.extract_strided_slice %83 {offsets = [0, 8, 0], sizes = [4, 8, 16], strides = [1, 1, 1]} : vector<4x16x16xf32> to vector<4x8x16xf32>
    %86 = arith.addf %84, %85 : vector<4x8x16xf32>
    %cst_28 = arith.constant dense<0.000000e+00> : vector<4x16xf32>
    %87 = vector.multi_reduction <add>, %86, %cst_28 [1] : vector<4x8x16xf32> to vector<4x16xf32>
    %c12_29 = arith.constant 12 : index
    %c0_30 = arith.constant 0 : index
    %88 = vector.load %arg3[%c12_29, %c0_30] : memref<16x16xf32, #tpu.memory_space<vmem>>, vector<4x16xf32>
    tpu.vector_store %arg3[%c12_29, %c0_30], %87 {strides = array<i32>} : memref<16x16xf32, #tpu.memory_space<vmem>>, vector<4x16xf32>,
    %c0_31 = arith.constant 0 : index
    %c0_32 = arith.constant 0 : index
    %89 = vector.load %arg3[%c0_31, %c0_32] : memref<16x16xf32, #tpu.memory_space<vmem>>, vector<16x16xf32>
    %90 = tpu.transpose %89, [1, 0] : vector<16x16xf32> -> vector<16x16xf32>
    %c1_33 = arith.constant 1 : index
    %c0_34 = arith.constant 0 : index
    %c0_35 = arith.constant 0 : index
    %91 = vector.load %arg2[%c1_33, %c0_34, %c0_35] : memref<2x16x16xf32, #tpu.memory_space<vmem>>, vector<1x16x16xf32>
    %92 = vector.shape_cast %91 : vector<1x16x16xf32> to vector<16x16xf32>
    %93 = vector.shape_cast %90 : vector<16x16xf32> to vector<1x16x16xf32>
    tpu.vector_store %arg2[%c1_33, %c0_34, %c0_35], %93 {strides = array<i32>} : memref<2x16x16xf32, #tpu.memory_space<vmem>>, vector<1x16x16xf32>,
    return
  }
  func.func @transform_0(%arg0: i32) -> (i32, i32, i32, i32) {
    %c0_i32 = arith.constant 0 : i32
    %c0_i32_0 = arith.constant 0 : i32
    %c0_i32_1 = arith.constant 0 : i32
    %c0_i32_2 = arith.constant 0 : i32
    %c0_i32_3 = arith.constant 0 : i32
    return %c0_i32, %c0_i32_0, %c0_i32_1, %c0_i32_2 : i32, i32, i32, i32
  }
  func.func @transform_1(%arg0: i32) -> (i32, i32, i32) {
    %c0_i32 = arith.constant 0 : i32
    %c0_i32_0 = arith.constant 0 : i32
    %c0_i32_1 = arith.constant 0 : i32
    %c0_i32_2 = arith.constant 0 : i32
    return %c0_i32, %c0_i32_0, %c0_i32_1 : i32, i32, i32
  }
}

</mosaic_0001>

<bundles_post_ra>
// kernel: model_forward.1
= control target key start
LH: loop header
LB: loop body
LE: loop exit
PB: predicated region body
PF: predicated region fallthrough
CT: control target
= control target key end

     0   :  { %6 = vsyncpa [#allocation4], 0  ;;  %s416_s9 = smov [#allocation3]   ;;  %s417_s11 = smov 128   ;;  %s587_s0 = inlined_call_operand.hbm [shape: f32[2,4,16,16], index: 0, kind: input, shape index: {}]   ;;  %s588_s1 = inlined_call_operand.vmem [shape: f32[2,16,16], index: 1, kind: output, shape index: {}]  }
   0x1   :  { %s11_s8 = sshll.u32 %s587_s0, 4  ;;  %s13_s10 = sshll.u32 %s416_s9, 4  ;;  %s12_s8 = int_to_ptr.hbm [resolvable:$true] %s11_s8  ;;  %s14_s10 = int_to_ptr.vmem [resolvable:$true] %s13_s10 }
   0x2   :  { %s418_s12 = smov 8  }
   0x3   :  { %19 = dma.hbm_to_vmem [thread:$0]  %s12_s8, 2048, %s14_s10, [#allocation4], %s417_s11, %s417_s11, %s418_s12  }
   0x4   :  { %414 = dma.done.wait [#allocation4], 2048  }
   0x5   :  { %415 = vsyncadd [#allocation4], 4294965248  ;;  %v24_v0 = vld [vmem:[#allocation3] sm:$0xff]  ;;  %v25_v1 = vld [vmem:[#allocation3 + $0x8] sm:$0xff]  ;;  %vm44_vm0 = vcmask 130048   ;;  %vm77_vm1 = vcmask 1041409  }
   0x6   :  { %v26_v2 = vld [vmem:[#allocation3 + $0x10] sm:$0xff]  ;;  %v27_v3 = vld [vmem:[#allocation3 + $0x18] sm:$0xff]  ;;  %v432_v4 = vld [vmem:[#allocation3 + $0x20] sm:$0xff]  ;;  %v32_v6 = vmul.f32 %v24_v0, %v24_v0  ;;  %v33_v7 = vmul.f32 %v25_v1, %v25_v1  ;;  %vm79_vm2 = vcmask 1042434   ;;  %vm81_vm3 = vcmask 1043459  }
   0x7   :  { %v434_v5 = vld [vmem:[#allocation3 + $0x28] sm:$0xff]  ;;  %v34_v8 = vmul.f32 %v26_v2, %v24_v0  ;;  %v86_v9 = vmul.f32 %v26_v2, %v26_v2  ;;  %v436_v10 = vld [vmem:[#allocation3 + $0x30] sm:$0xff]  ;;  %v438_v11 = vld [vmem:[#allocation3 + $0x38] sm:$0xff]  ;;  %v35_v12 = vmul.f32 %v27_v3, %v25_v1  ;;  %v36_v13 = vmul.f32 %v432_v4, %v24_v0 }
   0x8   :  { %v37_v14 = vmul.f32 %v434_v5, %v25_v1  ;;  %v87_v15 = vmul.f32 %v27_v3, %v27_v3  ;;  %v38_v16 = vmul.f32 %v436_v10, %v24_v0  ;;  %v39_v17 = vmul.f32 %v438_v11, %v25_v1  ;;  %v204_v36 = vld [vmem:[#allocation3 + $0x40] sm:$0xff]  ;;  %v205_v45 = vld [vmem:[#allocation3 + $0x48] sm:$0xff]  ;;  %v455_v54 = vld [vmem:[#allocation3 + $0x50] sm:$0xff] }
   0x9   :  { %v40_v18 = vadd.f32 %v33_v7, %v32_v6  ;;  %v88_v19 = vmul.f32 %v432_v4, %v26_v2  ;;  %v41_v20 = vadd.f32 %v35_v12, %v34_v8  ;;  %v89_v22 = vmul.f32 %v434_v5, %v27_v3  ;;  %v207_v63 = vld [vmem:[#allocation3 + $0x58] sm:$0xff]  ;;  %v458_v12 = vld [vmem:[#allocation3 + $0x60] sm:$0xff] }
   0xa   :  { %v42_v21 = vadd.f32 %v37_v14, %v36_v13  ;;  %v90_v23 = vmul.f32 %v436_v10, %v26_v2  ;;  %v43_v24 = vadd.f32 %v39_v17, %v38_v16  ;;  %v91_v26 = vmul.f32 %v438_v11, %v27_v3  ;;  %v460_v13 = vld [vmem:[#allocation3 + $0x68] sm:$0xff]  ;;  %v462_v17 = vld [vmem:[#allocation3 + $0x70] sm:$0xff] }
   0xb   :  { %v45_v25 = vsel %vm44_vm0, %v40_v18, 0.0  ;;  %v92_v27 = vadd.f32 %v87_v15, %v86_v9  ;;  %v52_v29 = vsel %vm44_vm0, %v41_v20, 0.0  ;;  %v93_v31 = vadd.f32 %v89_v22, %v88_v19 }
   0xc   :  { %v46_v28 = vrot.slane %v45_v25, 4  ;;  %v59_v30 = vsel %vm44_vm0, %v42_v21, 0.0  ;;  %v53_v32 = vrot.slane %v52_v29, 4  ;;  %v66_v34 = vsel %vm44_vm0, %v43_v24, 0.0 }
   0xd   :  { %v60_v33 = vrot.slane %v59_v30, 4  ;;  %v94_v35 = vadd.f32 %v91_v26, %v90_v23  ;;  %v67_v38 = vrot.slane %v66_v34, 4  ;;  %v95_v39 = vsel %vm44_vm0, %v92_v27, 0.0  ;;  %v466_v23 = vld [vmem:[#allocation3 + $0x78] sm:$0xff] }
   0xe   :  { %v47_v37 = vadd.f32 %v46_v28, %v45_v25  ;;  %v102_v40 = vsel %vm44_vm0, %v93_v31, 0.0  ;;  %v54_v41 = vadd.f32 %v53_v32, %v52_v29  ;;  %v96_v43 = vrot.slane %v95_v39, 4 }
   0xf   :  { %v61_v42 = vadd.f32 %v60_v33, %v59_v30  ;;  %v103_v44 = vrot.slane %v102_v40, 4  ;;  %v68_v47 = vadd.f32 %v67_v38, %v66_v34  ;;  %v109_v48 = vsel %vm44_vm0, %v94_v35, 0.0 }
  0x10   :  { %v48_v46 = vrot.slane %v47_v37, 2  ;;  %v212_v49 = vmul.f32 %v204_v36, %v204_v36  ;;  %v55_v50 = vrot.slane %v54_v41, 2  ;;  %vm84_vm4 = vcmask 125952  }
  0x11   :  { %v62_v51 = vrot.slane %v61_v42, 2  ;;  %v97_v52 = vadd.f32 %v96_v43, %v95_v39  ;;  %v104_v53 = vadd.f32 %v103_v44, %v102_v40  ;;  %v69_v56 = vrot.slane %v68_v47, 2 }
  0x12   :  { %v49_v55 = vadd.f32 %v48_v46, %v47_v37  ;;  %v110_v57 = vrot.slane %v109_v48, 4  ;;  %v213_v58 = vmul.f32 %v205_v45, %v205_v45  ;;  %v56_v59 = vadd.f32 %v55_v50, %v54_v41 }
  0x13   :  { %v63_v60 = vadd.f32 %v62_v51, %v61_v42  ;;  %v98_v61 = vrot.slane %v97_v52, 2  ;;  %v105_v62 = vrot.slane %v104_v53, 2  ;;  %v70_v1 = vadd.f32 %v69_v56, %v68_v47 }
  0x14   :  { %v50_v0 = vrot.slane %v49_v55, 1  ;;  %v111_v2 = vadd.f32 %v110_v57, %v109_v48  ;;  %v214_v3 = vmul.f32 %v455_v54, %v204_v36  ;;  %v57_v6 = vrot.slane %v56_v59, 1 }
  0x15   :  { %v64_v7 = vrot.slane %v63_v60, 1  ;;  %v99_v8 = vadd.f32 %v98_v61, %v97_v52  ;;  %v106_v9 = vadd.f32 %v105_v62, %v104_v53  ;;  %v71_v15 = vrot.slane %v70_v1, 1 }
  0x16   :  { %v51_v14 = vadd.f32 %v50_v0, %v49_v55  ;;  %v112_v16 = vrot.slane %v111_v2, 2  ;;  %v215_v18 = vmul.f32 %v207_v63, %v205_v45  ;;  %v58_v19 = vadd.f32 %v57_v6, %v56_v59 }
  0x17   :  { %v464_v20 = vadd.f32 %v64_v7, %v63_v60  ;;  %v100_v21 = vrot.slane %v99_v8, 1  ;;  %v107_v22 = vrot.slane %v106_v9, 1  ;;  %v468_v24 = vadd.f32 %v71_v15, %v70_v1 }
  0x18   :  { %v113_v25 = vadd.f32 %v112_v16, %v111_v2  ;;  %v216_v26 = vmul.f32 %v458_v12, %v204_v36  ;;  %v217_v27 = vmul.f32 %v460_v13, %v205_v45  ;;  %v78_v28 = vsel %vm77_vm1, %v58_v19, %v51_v14 }
  0x19   :  { %v101_v29 = vadd.f32 %v100_v21, %v99_v8  ;;  %v473_v30 = vadd.f32 %v107_v22, %v106_v9  ;;  %v218_v31 = vmul.f32 %v462_v17, %v204_v36  ;;  %v80_v32 = vsel %vm79_vm2, %v464_v20, %v78_v28 }
  0x1a   :  { %v114_v33 = vrot.slane %v113_v25, 1  ;;  %v219_v34 = vmul.f32 %v466_v23, %v205_v45  ;;  %v220_v35 = vadd.f32 %v213_v58, %v212_v49  ;;  %v82_v37 = vsel %vm81_vm3, %v468_v24, %v80_v32 }
  0x1b   :  { %v119_v38 = vsel %vm77_vm1, %v101_v29, %v58_v19  ;;  %v221_v39 = vadd.f32 %v215_v18, %v214_v3  ;;  %v222_v40 = vadd.f32 %v217_v27, %v216_v26  ;;  %85 = vst.msk [vmem:[#allocation2] sm:$0xf] %vm84_vm4, %v82_v37  ;;  %v261_v47 = vmul.f32 %v455_v54, %v455_v54 }
  0x1c   :  { %v483_v41 = vadd.f32 %v114_v33, %v113_v25  ;;  %v120_v36 = vsel %vm79_vm2, %v473_v30, %v119_v38  ;;  %v223_v42 = vadd.f32 %v219_v34, %v218_v31  ;;  %v224_v43 = vsel %vm44_vm0, %v220_v35, 0.0 }
  0x1d   :  { %v225_v44 = vrot.slane %v224_v43, 4  ;;  %v231_v45 = vsel %vm44_vm0, %v221_v39, 0.0  ;;  %v238_v46 = vsel %vm44_vm0, %v222_v40, 0.0  ;;  %v262_v55 = vmul.f32 %v207_v63, %v207_v63 }
  0x1e   :  { %v121_v48 = vsel %vm81_vm3, %v483_v41, %v120_v36  ;;  %v232_v49 = vrot.slane %v231_v45, 4  ;;  %v239_v50 = vrot.slane %v238_v46, 4  ;;  %v245_v51 = vsel %vm44_vm0, %v223_v42, 0.0 }
  0x1f   :  { %123 = vst.msk [vmem:[#allocation2 + $0x4] sm:$0xf] %vm84_vm4, %v121_v48  ;;  %v226_v52 = vadd.f32 %v225_v44, %v224_v43  ;;  %v246_v53 = vrot.slane %v245_v51, 4  ;;  %v263_v56 = vmul.f32 %v458_v12, %v455_v54  ;;  %v264_v59 = vmul.f32 %v460_v13, %v207_v63 }
  0x20   :  { %v233_v57 = vadd.f32 %v232_v49, %v231_v45  ;;  %v240_v58 = vadd.f32 %v239_v50, %v238_v46  ;;  %v265_v60 = vmul.f32 %v462_v17, %v455_v54  ;;  %v266_v0 = vmul.f32 %v466_v23, %v207_v63 }
  0x21   :  { %v227_v61 = vrot.slane %v226_v52, 2  ;;  %v247_v62 = vadd.f32 %v246_v53, %v245_v51  ;;  %v267_v1 = vadd.f32 %v262_v55, %v261_v47  ;;  %v268_v6 = vadd.f32 %v264_v59, %v263_v56 }
  0x22   :  { %v234_v2 = vrot.slane %v233_v57, 2  ;;  %v241_v3 = vrot.slane %v240_v58, 2  ;;  %v124_v7 = vmul.f32 %v432_v4, %v432_v4  ;;  %v269_v14 = vadd.f32 %v266_v0, %v265_v60 }
  0x23   :  { %v228_v8 = vadd.f32 %v227_v61, %v226_v52  ;;  %v248_v9 = vrot.slane %v247_v62, 2  ;;  %v270_v15 = vsel %vm44_vm0, %v267_v1, 0.0  ;;  %v277_v54 = vsel %vm44_vm0, %v268_v6, 0.0 }
  0x24   :  { %v235_v16 = vadd.f32 %v234_v2, %v233_v57  ;;  %v242_v18 = vadd.f32 %v241_v3, %v240_v58  ;;  %v271_v19 = vrot.slane %v270_v15, 4  ;;  %v278_v63 = vrot.slane %v277_v54, 4 }
  0x25   :  { %v229_v21 = vrot.slane %v228_v8, 1  ;;  %v249_v22 = vadd.f32 %v248_v9, %v247_v62  ;;  %v284_v25 = vsel %vm44_vm0, %v269_v14, 0.0  ;;  %v125_v35 = vmul.f32 %v434_v5, %v434_v5 }
  0x26   :  { %v167_v26 = vld [vmem:[#allocation2] sm:$0xff]  ;;  %v236_v27 = vrot.slane %v235_v16, 1  ;;  %v243_v28 = vrot.slane %v242_v18, 1  ;;  %v272_v29 = vadd.f32 %v271_v19, %v270_v15  ;;  %v285_v31 = vrot.slane %v284_v25, 4 }
  0x27   :  { %v230_v32 = vadd.f32 %v229_v21, %v228_v8  ;;  %v250_v33 = vrot.slane %v249_v22, 1  ;;  %v279_v34 = vadd.f32 %v278_v63, %v277_v54  ;;  %169 = vxpose.xlu0.b32.start [1/2] (short) (narrow) %v167_v26, 16  ;;  %v126_v43 = vmul.f32 %v436_v10, %v432_v4 }
  0x28   :  { %v237_v37 = vadd.f32 %v236_v27, %v235_v16  ;;  %v509_v38 = vadd.f32 %v243_v28, %v242_v18  ;;  %v273_v39 = vrot.slane %v272_v29, 2  ;;  %v286_v40 = vadd.f32 %v285_v31, %v284_v25 }
  0x29   :  { %v511_v36 = vadd.f32 %v250_v33, %v249_v22  ;;  %v280_v42 = vrot.slane %v279_v34, 2  ;;  %v127_v44 = vmul.f32 %v438_v11, %v434_v5  ;;  %v128_v48 = vadd.f32 %v125_v35, %v124_v7 }
  0x2a   :  { %v256_v45 = vsel %vm77_vm1, %v237_v37, %v230_v32  ;;  %v274_v46 = vadd.f32 %v273_v39, %v272_v29  ;;  %v287_v47 = vrot.slane %v286_v40, 2  ;;  %v151_v58 = vmul.f32 %v436_v10, %v436_v10 }
  0x2b   :  { %v257_v49 = vsel %vm79_vm2, %v509_v38, %v256_v45  ;;  %v281_v50 = vadd.f32 %v280_v42, %v279_v34  ;;  %v129_v51 = vadd.f32 %v127_v44, %v126_v43  ;;  %v130_v4 = vsel %vm44_vm0, %v128_v48, 0.0 }
  0x2c   :  { %v258_v52 = vsel %vm81_vm3, %v511_v36, %v257_v49  ;;  %v275_v53 = vrot.slane %v274_v46, 1  ;;  %v288_v55 = vadd.f32 %v287_v47, %v286_v40  ;;  %v131_v5 = vrot.slane %v130_v4, 4 }
  0x2d   :  { %v282_v56 = vrot.slane %v281_v50, 1  ;;  %260 = vst.msk [vmem:[#allocation2] sm:$0xf] %vm84_vm4, %v258_v52  ;;  %v137_v57 = vsel %vm44_vm0, %v129_v51, 0.0  ;;  %v152_v62 = vmul.f32 %v438_v11, %v438_v11  ;;  %v299_v2 = vmul.f32 %v458_v12, %v458_v12 }
  0x2e   :  { %v276_v59 = vadd.f32 %v275_v53, %v274_v46  ;;  %v289_v60 = vrot.slane %v288_v55, 1  ;;  %v138_v61 = vrot.slane %v137_v57, 4  ;;  %v132_v1 = vadd.f32 %v131_v5, %v130_v4 }
  0x2f   :  { %v283_v0 = vadd.f32 %v282_v56, %v281_v50  ;;  %v153_v8 = vadd.f32 %v152_v62, %v151_v58  ;;  %v300_v10 = vmul.f32 %v460_v13, %v460_v13  ;;  %v301_v15 = vmul.f32 %v462_v17, %v458_v12 }
  0x30   :  { %v290_v3 = vadd.f32 %v289_v60, %v288_v55  ;;  %v294_v6 = vsel %vm77_vm1, %v276_v59, %v237_v37  ;;  %v139_v7 = vadd.f32 %v138_v61, %v137_v57  ;;  %v133_v14 = vrot.slane %v132_v1, 2 }
  0x31   :  { %v295_v9 = vsel %vm79_vm2, %v283_v0, %v294_v6  ;;  %v154_v18 = vsel %vm44_vm0, %v153_v8, 0.0  ;;  %v302_v19 = vmul.f32 %v466_v23, %v460_v13  ;;  %v303_v22 = vadd.f32 %v300_v10, %v299_v2 }
  0x32   :  { %v296_v11 = vsel %vm81_vm3, %v290_v3, %v295_v9  ;;  %v140_v16 = vrot.slane %v139_v7, 2  ;;  %v134_v54 = vadd.f32 %v133_v14, %v132_v1  ;;  %v155_v21 = vrot.slane %v154_v18, 4 }
  0x33   :  { %298 = vst.msk [vmem:[#allocation2 + $0x4] sm:$0xf] %vm84_vm4, %v296_v11  ;;  %v304_v25 = vadd.f32 %v302_v19, %v301_v15  ;;  %v326_v26 = vmul.f32 %v462_v17, %v462_v17  ;;  %v327_v12 = vmul.f32 %v466_v23, %v466_v23  ;;  %v146_v28 = vsel %vm77_vm1, %v473_v30, %v464_v20 }
  0x34   :  { %v141_v63 = vadd.f32 %v140_v16, %v139_v7  ;;  %v135_v27 = vrot.slane %v134_v54, 1  ;;  %v156_v29 = vadd.f32 %v155_v21, %v154_v18  ;;  %v305_v13 = vsel %vm44_vm0, %v303_v22, 0.0 }
  0x35   :  { %v306_v32 = vrot.slane %v305_v13, 4  ;;  %v312_v33 = vsel %vm44_vm0, %v304_v25, 0.0  ;;  %v328_v34 = vadd.f32 %v327_v12, %v326_v26  ;;  %v162_v23 = vsel %vm77_vm1, %v483_v41, %v468_v24 }
  0x36   :  { %v142_v31 = vrot.slane %v141_v63, 1  ;;  %v136_v35 = vadd.f32 %v135_v27, %v134_v54  ;;  %v157_v37 = vrot.slane %v156_v29, 2  ;;  %v313_v39 = vrot.slane %v312_v33, 4 }
  0x37   :  { %v307_v40 = vadd.f32 %v306_v32, %v305_v13  ;;  %v329_v42 = vsel %vm44_vm0, %v328_v34, 0.0  ;;  %v321_v5 = vsel %vm77_vm1, %v283_v0, %v509_v38  ;;  %v337_v59 = vsel %vm77_vm1, %v290_v3, %v511_v36 }
  0x38   :  { %v143_v17 = vadd.f32 %v142_v31, %v141_v63  ;;  %v147_v20 = vsel %vm79_vm2, %v136_v35, %v146_v28  ;;  %v158_v30 = vadd.f32 %v157_v37, %v156_v29  ;;  %v314_v43 = vadd.f32 %v313_v39, %v312_v33 }
  0x39   :  { %v330_v44 = vrot.slane %v329_v42, 4  ;;  %v308_v47 = vrot.slane %v307_v40, 2 }
  0x3a   :  { %v342_v45 = vld [vmem:[#allocation2] sm:$0xff]  ;;  %v148_v46 = vsel %vm81_vm3, %v143_v17, %v147_v20  ;;  %v159_v48 = vrot.slane %v158_v30, 1  ;;  %v315_v49 = vrot.slane %v314_v43, 2  ;;  %v163_v24 = vsel %vm79_vm2, %v143_v17, %v162_v23 }
  0x3b   :  { %344 = vxpose.xlu1.b32.start [1/2] (short) (narrow) %v342_v45, 16  ;;  %150 = vst.msk [vmem:[#allocation2 + $0x8] sm:$0xf] %vm84_vm4, %v148_v46  ;;  %v331_v50 = vadd.f32 %v330_v44, %v329_v42  ;;  %v309_v41 = vadd.f32 %v308_v47, %v307_v40 }
  0x3c   :  { %v160_v51 = vadd.f32 %v159_v48, %v158_v30  ;;  %v316_v52 = vadd.f32 %v315_v49, %v314_v43 }
  0x3d   :  { %v332_v53 = vrot.slane %v331_v50, 2  ;;  %v310_v55 = vrot.slane %v309_v41, 1 }
  0x3e   :  { %v164_v4 = vsel %vm81_vm3, %v160_v51, %v163_v24  ;;  %v317_v56 = vrot.slane %v316_v52, 1 }
  0x3f   :  { %v333_v57 = vadd.f32 %v332_v53, %v331_v50  ;;  %166 = vst.msk [vmem:[#allocation2 + $0xc] sm:$0xf] %vm84_vm4, %v164_v4  ;;  %v311_v58 = vadd.f32 %v310_v55, %v309_v41 }
  0x40   :  { %v318_v60 = vadd.f32 %v317_v56, %v316_v52 }
  0x41   :  { %v334_v61 = vrot.slane %v333_v57, 1  ;;  %v322_v62 = vsel %vm79_vm2, %v311_v58, %v321_v5 }
  0x42   :  { %v338_v2 = vsel %vm79_vm2, %v318_v60, %v337_v59  ;;  %v323_v6 = vsel %vm81_vm3, %v318_v60, %v322_v62 }
  0x43   :  { %v335_v1 = vadd.f32 %v334_v61, %v333_v57 }
  0x45   :  { %v339_v7 = vsel %vm81_vm3, %v335_v1, %v338_v2 }
  0x46   :  { %v168_v8 = vld [vmem:[#allocation2 + $0x8] sm:$0xff] }
  0x47   :  { %325 = vst.msk [vmem:[#allocation2 + $0x8] sm:$0xf] %vm84_vm4, %v323_v6  ;;  %170 = vxpose.xlu0.b32.end [2/2] (short) (narrow) %v168_v8, 16 }
  0x48   :  { %341 = vst.msk [vmem:[#allocation2 + $0xc] sm:$0xf] %vm84_vm4, %v339_v7 }
  0x4f   :  { %v343_v38 = vld [vmem:[#allocation2 + $0x8] sm:$0xff] }
  0x50   :  { %345 = vxpose.xlu1.b32.end [2/2] (short) (narrow) %v343_v38, 16 }
  0xe3   :  { %v185_v36 = vpop.trf.xlu0 }
  0xe4   :  { %201 = vst.msk [vmem:[%s588_s1] sm:$0xff] %vm44_vm0, %v185_v36 }
  0xeb   :  { %v186_v0 = vpop.trf.xlu0 }
  0xec   :  { %v360_v3 = vpop.trf.xlu1  ;;  %202 = vst.msk [vmem:[%s588_s1 + $0x8] sm:$0xff] %vm44_vm0, %v186_v0 }
  0xed   :  { %384 = vst.msk [vmem:[%s588_s1 + $0x10] sm:$0xff] %vm44_vm0, %v360_v3 }
  0xf4   :  { %v361_v9 = vpop.trf.xlu1 }
  0xf5   :  { %385 = vst.msk [vmem:[%s588_s1 + $0x18] sm:$0xff] %vm44_vm0, %v361_v9 }
  0xf6   :  { %383 = vsyncpa [#allocation4], 1 }

</bundles_post_ra>
